<compile_context>
chip_gen: v7x
topology: tpu7x:2x2x1
jax: 0.10.0
libtpu: 0.0.40
codegen_flags: <defaults>
</compile_context>

<pallas_src>
import jax
import jax.numpy as jnp
from jax import lax
from jax.experimental import pallas as pl
from jax.experimental.pallas import tpu as pltpu


def _round_up(x, m):
    return -(-x // m) * m


def _pick_chunk_rows(tile_rows):
    """Largest convenient chunk (multiple of 8 sublanes) dividing tile_rows."""
    for c in (32, 16, 8):
        if tile_rows % c == 0:
            return c
    return tile_rows  # small, oddly-sized single tile: one chunk


def _make_mel_mse_kernel(tile_rows, chunk_rows):
    """Kernel: running sums of (mel-target)^2 and (postnet-target)^2."""
    n_chunks = tile_rows // chunk_rows

    def kernel(mel_ref, melp_ref, melt_ref, o1_ref, o2_ref):
        # Grid ids only at the top level of the kernel (interpret/lowering safe).
        step = pl.program_id(0)

        @pl.when(step == 0)
        def _init():
            o1_ref[...] = jnp.zeros(o1_ref.shape, o1_ref.dtype)
            o2_ref[...] = jnp.zeros(o2_ref.shape, o2_ref.dtype)

        def body(c, carry):
            a1, a2 = carry
            sl = pl.ds(c * chunk_rows, chunk_rows)
            # Cast after the (possibly bf16) data is already in VMEM.
            t = melt_ref[sl, :].astype(jnp.float32)
            d1 = mel_ref[sl, :].astype(jnp.float32) - t
            d2 = melp_ref[sl, :].astype(jnp.float32) - t
            return a1 + d1 * d1, a2 + d2 * d2

        zeros = jnp.zeros(o1_ref.shape, jnp.float32)
        a1, a2 = lax.fori_loop(0, n_chunks, body, (zeros, zeros))
        o1_ref[...] += a1
        o2_ref[...] += a2

    return kernel


def fastspeech2_loss(mel, mel_postnet, log_d_predicted, p_predicted, e_predicted,
                     log_d_target, f0_gt, e_target, mel_target, src_mask, mel_mask,
                     *, max_tile_rows=2048):
    """JAX/Pallas equivalent of FastSpeech2Loss.forward.

    Returns (mel_loss, mel_postnet_loss, d_loss, 0.1*p_loss, 0.1*e_loss).
    mel_mask is accepted but unused, exactly like the PyTorch reference.
    max_tile_rows: 2048 is safe everywhere; ~4096 recommended on v7x.
    """
    del mel_mask  # unused in the reference forward
    f32 = jnp.float32
    B, T, M = mel.shape
    n_rows = B * T

    # ---- mel / mel_postnet MSE numerators: Pallas streaming reduction ------
    # Contiguous leading-dim collapse -> free reshape, no pad, no copies.
    mel2d = mel.reshape(n_rows, M)
    melp2d = mel_postnet.reshape(n_rows, M)
    melt2d = mel_target.reshape(n_rows, M)

    if n_rows <= max_tile_rows:
        tile_rows = n_rows          # one full block; no divisibility constraint
        steps = 1
    else:
        tile_rows = max(8, (max_tile_rows // 8) * 8)
        steps = n_rows // tile_rows  # whole tiles only; ragged tail in wrapper
    chunk_rows = _pick_chunk_rows(tile_rows)
    used_rows = steps * tile_rows

    itemsize = jnp.dtype(mel.dtype).itemsize
    vmem_need = 3 * 2 * _round_up(tile_rows, 8) * _round_up(M, 128) * itemsize
    vmem_limit = int(min(max(vmem_need + (8 << 20), 32 << 20), 64 << 20))

    kernel = _make_mel_mse_kernel(tile_rows, chunk_rows)
    mel_spec = pl.BlockSpec((tile_rows, M), lambda i: (i, 0))
    acc_spec = pl.BlockSpec((chunk_rows, M), lambda i: (0, 0))
    acc_shape = jax.ShapeDtypeStruct((chunk_rows, M), f32)

    o1, o2 = pl.pallas_call(
        kernel,
        out_shape=(acc_shape, acc_shape),
        grid=(steps,),
        in_specs=[mel_spec, mel_spec, mel_spec],
        out_specs=(acc_spec, acc_spec),
        compiler_params=pltpu.CompilerParams(
            dimension_semantics=("arbitrary",),
            vmem_limit_bytes=vmem_limit),
    )(mel2d, melp2d, melt2d)

    mel_sq = jnp.sum(o1)
    melp_sq = jnp.sum(o2)

    if used_rows < n_rows:  # ragged tail (< tile_rows rows): O(tail) plain jnp
        t = melt2d[used_rows:].astype(f32)
        d1 = mel2d[used_rows:].astype(f32) - t
        d2 = melp2d[used_rows:].astype(f32) - t
        mel_sq = mel_sq + jnp.sum(d1 * d1)
        melp_sq = melp_sq + jnp.sum(d2 * d2)

    n_elems = float(n_rows * M)
    mel_loss = mel_sq / n_elems
    mel_postnet_loss = melp_sq / n_elems

    # ---- tiny [B, T_src] masked-MAE losses: plain jnp (a few KB of data) ----
    mask = src_mask.astype(bool)
    cnt = jnp.sum(mask.astype(f32))  # all-False mask -> NaN, as in reference

    def masked_mae(pred, tgt):
        diff = jnp.abs(pred.astype(f32) - tgt.astype(f32))
        return jnp.sum(jnp.where(mask, diff, 0.0)) / cnt

    d_loss = masked_mae(log_d_predicted, log_d_target)
    p_loss = masked_mae(p_predicted, f0_gt)
    e_loss = masked_mae(e_predicted, e_target)
    return mel_loss, mel_postnet_loss, d_loss, 0.1 * p_loss, 0.1 * e_loss


def _reference(mel, mel_postnet, log_d_predicted, p_predicted, e_predicted,
               log_d_target, f0_gt, e_target, mel_target, src_mask):
    """Pure-JAX reference reproducing the PyTorch semantics (verification)."""
    f32 = jnp.float32
    mel_loss = jnp.mean((mel.astype(f32) - mel_target.astype(f32)) ** 2)
    mel_postnet_loss = jnp.mean((mel_postnet.astype(f32) - mel_target.astype(f32)) ** 2)
    mask = src_mask.astype(bool)
    cnt = jnp.sum(mask.astype(f32))

    def mae(p, t):
        return jnp.sum(jnp.where(mask, jnp.abs(p.astype(f32) - t.astype(f32)), 0.0)) / cnt

    return (mel_loss, mel_postnet_loss, mae(log_d_predicted, log_d_target),
            0.1 * mae(p_predicted, f0_gt), 0.1 * mae(e_predicted, e_target))


def _make_inputs(key, B, T_mel, n_mels, T_src, lengths):
    ks = jax.random.split(key, 9)
    mel = jax.random.normal(ks[0], (B, T_mel, n_mels), jnp.float32)
    mel_postnet = jax.random.normal(ks[1], (B, T_mel, n_mels), jnp.float32)
    mel_target = jax.random.normal(ks[2], (B, T_mel, n_mels), jnp.float32)
    log_d_predicted = jax.random.normal(ks[3], (B, T_src), jnp.float32)
    log_d_target = jax.random.normal(ks[4], (B, T_src), jnp.float32)
    p_predicted = jax.random.normal(ks[5], (B, T_src), jnp.float32)
    f0_gt = jax.random.normal(ks[6], (B, T_src), jnp.float32)
    e_predicted = jax.random.normal(ks[7], (B, T_src), jnp.float32)
    e_target = jax.random.normal(ks[8], (B, T_src), jnp.float32)
    src_mask = jnp.arange(T_src)[None, :] < jnp.asarray(lengths, jnp.int32)[:, None]
    mel_mask = jnp.ones((B, T_mel), dtype=bool)  # unused, as in the reference
    return (mel, mel_postnet, log_d_predicted, p_predicted, e_predicted,
            log_d_target, f0_gt, e_target, mel_target, src_mask, mel_mask)


if __name__ == "__main__":
    key = jax.random.PRNGKey(0)
    k1, k2 = jax.random.split(key)

    # Case 1: small shapes -> single full-array tile path.
    args1 = _make_inputs(k1, B=2, T_mel=16, n_mels=32, T_src=8, lengths=[8, 5])
    outs1 = jax.block_until_ready(fastspeech2_loss(*args1))
    refs1 = _reference(*args1[:10])
    for got, want in zip(outs1, refs1):
        assert jnp.allclose(got, want, rtol=1e-5, atol=1e-5), (got, want)

    # Case 2: multi-tile grid + in-tile chunk loop + ragged-tail path.
    args2 = _make_inputs(k2, B=2, T_mel=70, n_mels=32, T_src=11, lengths=[11, 7])
    outs2 = jax.block_until_ready(fastspeech2_loss(*args2, max_tile_rows=64))
    refs2 = _reference(*args2[:10])
    for got, want in zip(outs2, refs2):
        assert jnp.allclose(got, want, rtol=1e-5, atol=1e-5), (got, want)

    print("KERNEL_OK")
</pallas_src>

<mosaic_0001>
module attributes {stable_mosaic.version = 11 : i64} {
  func.func @kernel(%arg0: i32, %arg1: memref<32x32xf32, #tpu.memory_space<vmem>>, %arg2: memref<32x32xf32, #tpu.memory_space<vmem>>, %arg3: memref<32x32xf32, #tpu.memory_space<vmem>>, %arg4: memref<32x32xf32, #tpu.memory_space<vmem>>, %arg5: memref<32x32xf32, #tpu.memory_space<vmem>>) attributes {dimension_semantics = [#tpu.dimension_semantics<arbitrary>], iteration_bounds = array<i64: 1>, scalar_prefetch = 0 : i64, scratch_operands = 0 : i64, tpu.core_type = #tpu.core_type<tc>, window_params = [{transform_indices = @transform_0, window_bounds = array<i64: 32, 32>}, {transform_indices = @transform_1, window_bounds = array<i64: 32, 32>}, {transform_indices = @transform_2, window_bounds = array<i64: 32, 32>}, {pipeline_mode = #tpu.pipeline_mode<synchronous>, transform_indices = @transform_3, window_bounds = array<i64: 32, 32>}, {pipeline_mode = #tpu.pipeline_mode<synchronous>, transform_indices = @transform_4, window_bounds = array<i64: 32, 32>}]} {
    %c0_i32 = arith.constant 0 : i32
    %0 = arith.cmpi eq, %arg0, %c0_i32 : i32
    %1 = arith.extui %0 : i1 to i32
    %c0_i32_0 = arith.constant 0 : i32
    %2 = arith.cmpi ne, %1, %c0_i32_0 : i32
    scf.if %2 {
      %cst_12 = arith.constant 0.000000e+00 : f32
      %23 = vector.broadcast %cst_12 : f32 to vector<32x32xf32>
      %c0_13 = arith.constant 0 : index
      %c0_14 = arith.constant 0 : index
      %24 = vector.load %arg4[%c0_13, %c0_14] : memref<32x32xf32, #tpu.memory_space<vmem>>, vector<32x32xf32>
      tpu.vector_store %arg4[%c0_13, %c0_14], %23 {strides = array<i32>} : memref<32x32xf32, #tpu.memory_space<vmem>>, vector<32x32xf32>,
      %cst_15 = arith.constant 0.000000e+00 : f32
      %25 = vector.broadcast %cst_15 : f32 to vector<32x32xf32>
      %c0_16 = arith.constant 0 : index
      %c0_17 = arith.constant 0 : index
      %26 = vector.load %arg5[%c0_16, %c0_17] : memref<32x32xf32, #tpu.memory_space<vmem>>, vector<32x32xf32>
      tpu.vector_store %arg5[%c0_16, %c0_17], %25 {strides = array<i32>} : memref<32x32xf32, #tpu.memory_space<vmem>>, vector<32x32xf32>,
    } else {
    }
    %cst = arith.constant 0.000000e+00 : f32
    %3 = vector.broadcast %cst : f32 to vector<32x32xf32>
    %c0_i32_1 = arith.constant 0 : i32
    %c32_i32 = arith.constant 32 : i32
    %4 = arith.muli %c0_i32_1, %c32_i32 : i32
    %5 = arith.index_cast %4 : i32 to index
    %c0 = arith.constant 0 : index
    %6 = vector.load %arg3[%5, %c0] : memref<32x32xf32, #tpu.memory_space<vmem>>, vector<32x32xf32>
    %7 = arith.index_cast %4 : i32 to index
    %c0_2 = arith.constant 0 : index
    %8 = vector.load %arg1[%7, %c0_2] : memref<32x32xf32, #tpu.memory_space<vmem>>, vector<32x32xf32>
    %9 = arith.subf %8, %6 : vector<32x32xf32>
    %10 = arith.index_cast %4 : i32 to index
    %c0_3 = arith.constant 0 : index
    %11 = vector.load %arg2[%10, %c0_3] : memref<32x32xf32, #tpu.memory_space<vmem>>, vector<32x32xf32>
    %12 = arith.subf %11, %6 : vector<32x32xf32>
    %13 = arith.mulf %9, %9 : vector<32x32xf32>
    %14 = arith.addf %3, %13 : vector<32x32xf32>
    %15 = arith.mulf %12, %12 : vector<32x32xf32>
    %16 = arith.addf %3, %15 : vector<32x32xf32>
    %c1_i32 = arith.constant 1 : i32
    %c0_4 = arith.constant 0 : index
    %c0_5 = arith.constant 0 : index
    %17 = vector.load %arg4[%c0_4, %c0_5] : memref<32x32xf32, #tpu.memory_space<vmem>>, vector<32x32xf32>
    %18 = arith.addf %17, %14 : vector<32x32xf32>
    %c0_6 = arith.constant 0 : index
    %c0_7 = arith.constant 0 : index
    %19 = vector.load %arg4[%c0_6, %c0_7] : memref<32x32xf32, #tpu.memory_space<vmem>>, vector<32x32xf32>
    tpu.vector_store %arg4[%c0_6, %c0_7], %18 {strides = array<i32>} : memref<32x32xf32, #tpu.memory_space<vmem>>, vector<32x32xf32>,
    %c0_8 = arith.constant 0 : index
    %c0_9 = arith.constant 0 : index
    %20 = vector.load %arg5[%c0_8, %c0_9] : memref<32x32xf32, #tpu.memory_space<vmem>>, vector<32x32xf32>
    %21 = arith.addf %20, %16 : vector<32x32xf32>
    %c0_10 = arith.constant 0 : index
    %c0_11 = arith.constant 0 : index
    %22 = vector.load %arg5[%c0_10, %c0_11] : memref<32x32xf32, #tpu.memory_space<vmem>>, vector<32x32xf32>
    tpu.vector_store %arg5[%c0_10, %c0_11], %21 {strides = array<i32>} : memref<32x32xf32, #tpu.memory_space<vmem>>, vector<32x32xf32>,
    return
  }
  func.func @transform_0(%arg0: i32) -> (i32, i32) {
    %c0_i32 = arith.constant 0 : i32
    %c0_i32_0 = arith.constant 0 : i32
    return %arg0, %c0_i32 : i32, i32
  }
  func.func @transform_1(%arg0: i32) -> (i32, i32) {
    %c0_i32 = arith.constant 0 : i32
    %c0_i32_0 = arith.constant 0 : i32
    return %arg0, %c0_i32 : i32, i32
  }
  func.func @transform_2(%arg0: i32) -> (i32, i32) {
    %c0_i32 = arith.constant 0 : i32
    %c0_i32_0 = arith.constant 0 : i32
    return %arg0, %c0_i32 : i32, i32
  }
  func.func @transform_3(%arg0: i32) -> (i32, i32) {
    %c0_i32 = arith.constant 0 : i32
    %c0_i32_0 = arith.constant 0 : i32
    %c0_i32_1 = arith.constant 0 : i32
    return %c0_i32, %c0_i32_0 : i32, i32
  }
  func.func @transform_4(%arg0: i32) -> (i32, i32) {
    %c0_i32 = arith.constant 0 : i32
    %c0_i32_0 = arith.constant 0 : i32
    %c0_i32_1 = arith.constant 0 : i32
    return %c0_i32, %c0_i32_0 : i32, i32
  }
}

</mosaic_0001>

<bundles_post_ra>
// kernel: tpu_custom_call.1
= control target key start
LH: loop header
LB: loop body
LE: loop exit
PB: predicated region body
PF: predicated region fallthrough
CT: control target
= control target key end

     0   :  { %10 = vsyncpa [#allocation3], 0  ;;  %s431_s0 = inlined_call_operand.hbm [shape: f32[32,32], index: 0, kind: input, shape index: {}]   ;;  %s432_s1 = inlined_call_operand.hbm [shape: f32[32,32], index: 1, kind: input, shape index: {}]   ;;  %s433_s2 = inlined_call_operand.hbm [shape: f32[32,32], index: 2, kind: input, shape index: {}]   ;;  %s434_s3 = inlined_call_operand.hbm [shape: f32[32,32], index: 3, kind: output, shape index: {0}]   ;;  %s435_s4 = inlined_call_operand.hbm [shape: f32[32,32], index: 4, kind: output, shape index: {1}]  }
   0x1   :  { %11 = vsyncpa [#allocation6], 0 }
   0x2   :  { %12 = vsyncpa [#allocation4], 0 }
   0x3   :  { %13 = vsyncpa [#allocation10], 0  ;;  %s293_s15 = smov [#allocation5]   ;;  %s294_s17 = smov [#allocation2]  }
   0x4   :  { %s31_s16 = sshll.u32 %s293_s15, 4  ;;  %s19_s18 = sshll.u32 %s294_s17, 4  ;;  %s32_s16 = int_to_ptr.vmem [resolvable:$true] %s31_s16  ;;  %s326_s18 = int_to_ptr.vmem [resolvable:$true] %s19_s18 }
   0x5   :  { %s175_s21 = scalar_lea.hbm %s432_s1, 512 }
   0x6   :  { %p176_p0 = scmp.ne.s32.totalorder %s432_s1, %s175_s21  ;;  %p179_p1 = scmp.lt.u32.totalorder %s175_s21, %s432_s1 }
   0x8   :  { %p181_p2 = pnand %p179_p1, %p176_p0 }
   0xa   :  { %184 = shalt.err (!%p181_p2)
}
   0xb   :  { %s185_s26 = scalar_lea.vmem %s32_s16, 512  ;;  %p190_p4 = scmp.lt.s32.totalorder %s32_s16, %s32_s16 }
   0xc   :  { %p186_p3 = scmp.ne.s32.totalorder %s32_s16, %s185_s26  ;;  %p191_p5 = scmp.lt.s32.totalorder %s185_s26, %s185_s26 }
   0xe   :  { %p192_p6 = por %p191_p5, %p190_p4 }
  0x10   :  { %p193_p7 = pnand %p192_p6, %p186_p3 }
  0x12   :  { %196 = shalt.err (!%p193_p7)
}
  0x13   :  { %s295_s27 = smov 128   ;;  %s296_s28 = smov 8  }
  0x14   :  { %37 = dma.hbm_to_vmem [thread:$0]  %s432_s1, 512, %s32_s16, [#allocation6], %s295_s27, %s295_s27, %s296_s28  }
  0x15   :  { %s197_s7 = scalar_lea.hbm %s431_s0, 512 }
  0x16   :  { %p198_p8 = scmp.ne.s32.totalorder %s431_s0, %s197_s7  ;;  %p201_p9 = scmp.lt.u32.totalorder %s197_s7, %s431_s0 }
  0x18   :  { %p203_p10 = pnand %p201_p9, %p198_p8 }
  0x1a   :  { %206 = shalt.err (!%p203_p10)
}
  0x1b   :  { %s207_s12 = scalar_lea.vmem %s326_s18, 512  ;;  %p212_p12 = scmp.lt.s32.totalorder %s326_s18, %s326_s18 }
  0x1c   :  { %p208_p11 = scmp.ne.s32.totalorder %s326_s18, %s207_s12  ;;  %p213_p13 = scmp.lt.s32.totalorder %s207_s12, %s207_s12 }
  0x1e   :  { %p214_p0 = por %p213_p13, %p212_p12 }
  0x20   :  { %p215_p1 = pnand %p214_p0, %p208_p11 }
  0x22   :  { %218 = shalt.err (!%p215_p1)
}
  0x23   :  { %25 = dma.hbm_to_vmem [thread:$0]  %s431_s0, 512, %s326_s18, [#allocation3], %s295_s27, %s295_s27, %s296_s28  }
  0x24   :  { %s297_s14 = smov [#allocation7]   ;;  %s219_s19 = scalar_lea.hbm %s433_s2, 512 }
  0x25   :  { %s43_s15 = sshll.u32 %s297_s14, 4  ;;  %p220_p2 = scmp.ne.s32.totalorder %s433_s2, %s219_s19  ;;  %s44_s15 = int_to_ptr.vmem [resolvable:$true] %s43_s15 }
  0x26   :  { %p223_p3 = scmp.lt.u32.totalorder %s219_s19, %s433_s2 }
  0x28   :  { %p225_p4 = pnand %p223_p3, %p220_p2 }
  0x2a   :  { %228 = shalt.err (!%p225_p4)
}
  0x2b   :  { %s229_s24 = scalar_lea.vmem %s44_s15, 512  ;;  %p234_p6 = scmp.lt.s32.totalorder %s44_s15, %s44_s15 }
  0x2c   :  { %p230_p5 = scmp.ne.s32.totalorder %s44_s15, %s229_s24  ;;  %p235_p7 = scmp.lt.s32.totalorder %s229_s24, %s229_s24 }
  0x2e   :  { %p236_p8 = por %p235_p7, %p234_p6 }
  0x30   :  { %p237_p9 = pnand %p236_p8, %p230_p5 }
  0x32   :  { %240 = shalt.err (!%p237_p9)
}
  0x33   :  { %49 = dma.hbm_to_vmem [thread:$0]  %s433_s2, 512, %s44_s15, [#allocation6], %s295_s27, %s295_s27, %s296_s28  }
  0x34   :  { %285 = dma.done.wait [#allocation3], 512  }
  0x35   :  { %286 = vsyncadd [#allocation3], 4294966784 }
  0x36   :  { %287 = dma.done.wait [#allocation6], 1024  }
  0x37   :  { %288 = vsyncadd [#allocation6], 4294966272  ;;  %vm63_vm0 = vcmask 261120   ;;  %v298_v0 = vmov 0.0   ;;  %v72_v1 = vld [vmem:[#allocation7] sm:$0xff]  ;;  %v73_v3 = vld [vmem:[#allocation7 + $0x8] sm:$0xff] }
  0x38   :  { %64 = vst.msk [vmem:[#allocation8] sm:$0xff] %vm63_vm0, %v298_v0  ;;  %65 = vst.msk [vmem:[#allocation8 + $0x8] sm:$0xff] %vm63_vm0, %v298_v0  ;;  %v76_v2 = vld [vmem:[#allocation2] sm:$0xff]  ;;  %v77_v5 = vld [vmem:[#allocation2 + $0x8] sm:$0xff]  ;;  %s299_s2 = smov [#allocation8]   ;;  %s300_s26 = smov [#allocation9]  }
  0x39   :  { %66 = vst.msk [vmem:[#allocation8 + $0x10] sm:$0xff] %vm63_vm0, %v298_v0  ;;  %67 = vst.msk [vmem:[#allocation8 + $0x18] sm:$0xff] %vm63_vm0, %v298_v0  ;;  %v80_v4 = vsub.f32 %v76_v2, %v72_v1  ;;  %v81_v7 = vsub.f32 %v77_v5, %v73_v3  ;;  %v74_v8 = vld [vmem:[#allocation7 + $0x10] sm:$0xff]  ;;  %v75_v13 = vld [vmem:[#allocation7 + $0x18] sm:$0xff]  ;;  %s138_s25 = sshll.u32 %s299_s2, 4  ;;  %s150_s29 = sshll.u32 %s300_s26, 4  ;;  %s139_s25 = int_to_ptr.vmem [resolvable:$true] %s138_s25  ;;  %s390_s29 = int_to_ptr.vmem [resolvable:$true] %s150_s29 }
  0x3a   :  { %68 = vst.msk [vmem:[#allocation9] sm:$0xff] %vm63_vm0, %v298_v0  ;;  %69 = vst.msk [vmem:[#allocation9 + $0x8] sm:$0xff] %vm63_vm0, %v298_v0  ;;  %v78_v9 = vld [vmem:[#allocation2 + $0x10] sm:$0xff]  ;;  %v79_v14 = vld [vmem:[#allocation2 + $0x18] sm:$0xff]  ;;  %s241_s30 = scalar_lea.vmem %s139_s25, 512  ;;  %p246_p11 = scmp.lt.s32.totalorder %s139_s25, %s139_s25 }
  0x3b   :  { %70 = vst.msk [vmem:[#allocation9 + $0x10] sm:$0xff] %vm63_vm0, %v298_v0  ;;  %71 = vst.msk [vmem:[#allocation9 + $0x18] sm:$0xff] %vm63_vm0, %v298_v0  ;;  %v92_v10 = vmul.f32 %v80_v4, %v80_v4  ;;  %v82_v12 = vsub.f32 %v78_v9, %v74_v8  ;;  %v93_v15 = vmul.f32 %v81_v7, %v81_v7  ;;  %v84_v18 = vld [vmem:[#allocation5] sm:$0xff]  ;;  %v85_v19 = vld [vmem:[#allocation5 + $0x8] sm:$0xff]  ;;  %p242_p10 = scmp.ne.s32.totalorder %s139_s25, %s241_s30  ;;  %p247_p12 = scmp.lt.s32.totalorder %s241_s30, %s241_s30 }
  0x3c   :  { %v83_v17 = vsub.f32 %v79_v14, %v75_v13  ;;  %v88_v23 = vsub.f32 %v84_v18, %v72_v1  ;;  %v89_v24 = vsub.f32 %v85_v19, %v73_v3  ;;  %v86_v25 = vld [vmem:[#allocation5 + $0x10] sm:$0xff]  ;;  %v87_v31 = vld [vmem:[#allocation5 + $0x18] sm:$0xff] }
  0x3d   :  { %v94_v21 = vmul.f32 %v82_v12, %v82_v12  ;;  %v90_v30 = vsub.f32 %v86_v25, %v74_v8  ;;  %v91_v36 = vsub.f32 %v87_v31, %v75_v13  ;;  %p248_p13 = por %p247_p12, %p246_p11 }
  0x3e   :  { %v95_v27 = vmul.f32 %v83_v17, %v83_v17  ;;  %v100_v33 = vmul.f32 %v88_v23, %v88_v23  ;;  %v101_v34 = vmul.f32 %v89_v24, %v89_v24 }
  0x3f   :  { %v108_v6 = vld [vmem:[#allocation8] sm:$0xff]  ;;  %v109_v11 = vld [vmem:[#allocation8 + $0x8] sm:$0xff]  ;;  %v102_v38 = vmul.f32 %v90_v30, %v90_v30  ;;  %v103_v42 = vmul.f32 %v91_v36, %v91_v36  ;;  %p249_p0 = pnand %p248_p13, %p242_p10 }
  0x40   :  { %v110_v16 = vld [vmem:[#allocation8 + $0x10] sm:$0xff]  ;;  %v112_v20 = vadd.f32 %v108_v6, %v92_v10  ;;  %v111_v22 = vld [vmem:[#allocation8 + $0x18] sm:$0xff]  ;;  %v113_v26 = vadd.f32 %v109_v11, %v93_v15 }
  0x41   :  { %v121_v28 = vld [vmem:[#allocation9] sm:$0xff]  ;;  %v122_v29 = vld [vmem:[#allocation9 + $0x8] sm:$0xff]  ;;  %v114_v32 = vadd.f32 %v110_v16, %v94_v21  ;;  %v115_v37 = vadd.f32 %v111_v22, %v95_v27 }
  0x42   :  { %117 = vst.msk [vmem:[#allocation8] sm:$0xff] %vm63_vm0, %v112_v20  ;;  %v123_v35 = vld [vmem:[#allocation9 + $0x10] sm:$0xff]  ;;  %118 = vst.msk [vmem:[#allocation8 + $0x8] sm:$0xff] %vm63_vm0, %v113_v26  ;;  %v124_v39 = vld [vmem:[#allocation9 + $0x18] sm:$0xff]  ;;  %v125_v40 = vadd.f32 %v121_v28, %v100_v33  ;;  %v126_v41 = vadd.f32 %v122_v29, %v101_v34 }
  0x43   :  { %119 = vst.msk [vmem:[#allocation8 + $0x10] sm:$0xff] %vm63_vm0, %v114_v32  ;;  %120 = vst.msk [vmem:[#allocation8 + $0x18] sm:$0xff] %vm63_vm0, %v115_v37  ;;  %v127_v43 = vadd.f32 %v123_v35, %v102_v38  ;;  %v128_v44 = vadd.f32 %v124_v39, %v103_v42 }
  0x44   :  { %129 = vst.msk [vmem:[#allocation9] sm:$0xff] %vm63_vm0, %v125_v40  ;;  %130 = vst.msk [vmem:[#allocation9 + $0x8] sm:$0xff] %vm63_vm0, %v126_v41 }
  0x45   :  { %252 = shalt.err (!%p249_p0)
}
  0x46   :  { %s253_s7 = scalar_lea.hbm %s434_s3, 512 }
  0x47   :  { %p254_p1 = scmp.ne.s32.totalorder %s434_s3, %s253_s7  ;;  %p257_p2 = scmp.lt.u32.totalorder %s253_s7, %s434_s3 }
  0x49   :  { %p259_p3 = pnand %p257_p2, %p254_p1 }
  0x4b   :  { %262 = shalt.err (!%p259_p3)
}
  0x4c   :  { %144 = dma.vmem_to_hbm [thread:$0]  %s139_s25, 512, %s434_s3, [#allocation4], %s295_s27, %s295_s27, %s296_s28   ;;  %131 = vst.msk [vmem:[#allocation9 + $0x10] sm:$0xff] %vm63_vm0, %v127_v43  ;;  %132 = vst.msk [vmem:[#allocation9 + $0x18] sm:$0xff] %vm63_vm0, %v128_v44 }
  0x4d   :  { %s263_s13 = scalar_lea.vmem %s390_s29, 512  ;;  %p268_p5 = scmp.lt.s32.totalorder %s390_s29, %s390_s29 }
  0x4e   :  { %p264_p4 = scmp.ne.s32.totalorder %s390_s29, %s263_s13  ;;  %p269_p6 = scmp.lt.s32.totalorder %s263_s13, %s263_s13 }
  0x50   :  { %p270_p7 = por %p269_p6, %p268_p5 }
  0x52   :  { %p271_p8 = pnand %p270_p7, %p264_p4 }
  0x54   :  { %274 = shalt.err (!%p271_p8)
}
  0x55   :  { %s275_s16 = scalar_lea.hbm %s435_s4, 512 }
  0x56   :  { %p276_p9 = scmp.ne.s32.totalorder %s435_s4, %s275_s16  ;;  %p279_p10 = scmp.lt.u32.totalorder %s275_s16, %s435_s4 }
  0x58   :  { %p281_p11 = pnand %p279_p10, %p276_p9 }
  0x5a   :  { %284 = shalt.err (!%p281_p11)
}
  0x5b   :  { %156 = dma.vmem_to_hbm [thread:$0]  %s390_s29, 512, %s435_s4, [#allocation10], %s295_s27, %s295_s27, %s296_s28  }
  0x5c   :  { %289 = dma.done.wait [#allocation4], 512  }
  0x5d   :  { %290 = vsyncadd [#allocation4], 4294966784 }
  0x5e   :  { %291 = dma.done.wait [#allocation10], 512  }
  0x5f   :  { %292 = vsyncadd [#allocation10], 4294966784 }
  0x60   :  { %163 = vsyncpa [#allocation3], 1 }
  0x61   :  { %164 = vsyncpa [#allocation6], 1 }
  0x62   :  { %165 = vsyncpa [#allocation4], 1 }
  0x63   :  { %166 = vsyncpa [#allocation10], 1 }

</bundles_post_ra>
